<compile_context>
chip_gen: v5e
topology: v5e:2x2
jax: 0.10.0
libtpu: 0.0.40
codegen_flags: <defaults>
</compile_context>

<pallas_src>
import functools

import jax
import jax.numpy as jnp
from jax.experimental import pallas as pl
from jax.experimental.pallas import tpu as pltpu

D_IN, H1, H2, D_OUT = 1, 7, 3, 1
LANES = 128

# Flat parameter layout (all scalars live in one SMEM array).
_OFF_W1 = 0                     # w1[0, k]  -> _OFF_W1 + k           (7)
_OFF_B1 = _OFF_W1 + D_IN * H1   # b1[k]     -> _OFF_B1 + k           (7)
_OFF_W2 = _OFF_B1 + H1          # w2[k, j]  -> _OFF_W2 + k*H2 + j    (21)
_OFF_B2 = _OFF_W2 + H1 * H2     # b2[j]     -> _OFF_B2 + j           (3)
_OFF_W3 = _OFF_B2 + H2          # w3[j, 0]  -> _OFF_W3 + j           (3)
_OFF_B3 = _OFF_W3 + H2          # b3[0]                              (1)
N_PARAMS = _OFF_B3 + D_OUT      # 42


def _sigmoid(z):
    # sigmoid(z) == 0.5 * tanh(0.5 * z) + 0.5  (single EUP transcendental).
    return 0.5 * jnp.tanh(0.5 * z) + 0.5


def mlp_kernel(p_ref, x_ref, o_ref):
    # p_ref: SMEM f32[42] (scalar-prefetched packed weights/biases)
    # x_ref: VMEM f32[tb, 128] lane-dense batch tile
    x = x_ref[...].astype(jnp.float32)

    # Layer 1: Linear(1, 7) + sigmoid  -> 7 broadcast FMAs on the VPU.
    h1 = [
        _sigmoid(x * p_ref[_OFF_W1 + k] + p_ref[_OFF_B1 + k])
        for k in range(H1)
    ]

    # Layer 2: Linear(7, 3) + sigmoid  -> 21 FMAs.
    h2 = []
    for j in range(H2):
        acc = h1[0] * p_ref[_OFF_W2 + 0 * H2 + j]
        for k in range(1, H1):
            acc = acc + h1[k] * p_ref[_OFF_W2 + k * H2 + j]
        h2.append(_sigmoid(acc + p_ref[_OFF_B2 + j]))

    # Layer 3: Linear(3, 1) + sigmoid  -> 3 FMAs.
    acc = h2[0] * p_ref[_OFF_W3 + 0]
    for j in range(1, H2):
        acc = acc + h2[j] * p_ref[_OFF_W3 + j]
    y = _sigmoid(acc + p_ref[_OFF_B3])

    o_ref[...] = y.astype(o_ref.dtype)


def pack_params(params):
    return jnp.concatenate([
        params["w1"].reshape(-1), params["b1"].reshape(-1),
        params["w2"].reshape(-1), params["b2"].reshape(-1),
        params["w3"].reshape(-1), params["b3"].reshape(-1),
    ]).astype(jnp.float32)


def _round_up(n, m):
    return ((n + m - 1) // m) * m


@functools.partial(jax.jit, static_argnames=("tile_rows",))
def neural_network_forward(x, params, *, tile_rows=512):
    """x: [B, D_in=1] float32. params: dict w1,b1,w2,b2,w3,b3 ([in,out], [1,out])."""
    B = x.shape[0]
    dtype = x.dtype

    # Lane-dense layout: flatten [B, 1] -> [rows_pad, 128].
    rows = max(1, -(-B // LANES))
    tb = min(tile_rows, _round_up(rows, 8))      # tile rows, multiple of 8 (sublane)
    rows_pad = _round_up(rows, tb)
    b_pad = rows_pad * LANES

    x_flat = jnp.pad(x.reshape(-1), (0, b_pad - B))
    x2d = x_flat.reshape(rows_pad, LANES)

    p_flat = pack_params(params)

    out2d = pl.pallas_call(
        mlp_kernel,
        out_shape=jax.ShapeDtypeStruct((rows_pad, LANES), dtype),
        grid_spec=pltpu.PrefetchScalarGridSpec(
            num_scalar_prefetch=1,               # packed weights/biases -> SMEM
            grid=(rows_pad // tb,),
            in_specs=[pl.BlockSpec((tb, LANES), lambda i, p: (i, 0))],
            out_specs=pl.BlockSpec((tb, LANES), lambda i, p: (i, 0)),
        ),
        compiler_params=pltpu.CompilerParams(
            dimension_semantics=("parallel",),
        ),
    )(p_flat, x2d)

    # Strip batch padding, restore [B, D_out].
    return out2d.reshape(-1)[:B].reshape(B, D_OUT)


def init_params(key, d_in=D_IN, h1=H1, h2=H2, d_out=D_OUT, dtype=jnp.float32):
    ks = jax.random.split(key, 6)

    def linear(kw, kb, fan_in, fan_out):
        # Mimic PyTorch nn.Linear init: U(-1/sqrt(fan_in), 1/sqrt(fan_in))
        bound = 1.0 / jnp.sqrt(jnp.asarray(fan_in, dtype))
        w = jax.random.uniform(kw, (fan_in, fan_out), dtype, -bound, bound)
        b = jax.random.uniform(kb, (1, fan_out), dtype, -bound, bound)
        return w, b

    w1, b1 = linear(ks[0], ks[1], d_in, h1)
    w2, b2 = linear(ks[2], ks[3], h1, h2)
    w3, b3 = linear(ks[4], ks[5], h2, d_out)
    return {"w1": w1, "b1": b1, "w2": w2, "b2": b2, "w3": w3, "b3": b3}


def reference_forward(x, p):
    h1 = jax.nn.sigmoid(x @ p["w1"] + p["b1"])
    h2 = jax.nn.sigmoid(h1 @ p["w2"] + p["b2"])
    return jax.nn.sigmoid(h2 @ p["w3"] + p["b3"])


if __name__ == "__main__":
    key = jax.random.PRNGKey(0)
    k_x, k_p, k_x2 = jax.random.split(key, 3)

    params = init_params(k_p)

    # Small-batch check (exercise the padding + single-tile path).
    B = 8
    x = jax.random.normal(k_x, (B, D_IN), jnp.float32)
    out = jax.block_until_ready(neural_network_forward(x, params))
    ref = reference_forward(x, params)
    assert out.shape == (B, D_OUT)
    assert jnp.allclose(out, ref, atol=1e-5, rtol=1e-5), "mismatch vs reference (B=8)"

    # Multi-tile check (exercise the parallel batch grid / pipelined path).
    B2 = 2048
    x2 = jax.random.normal(k_x2, (B2, D_IN), jnp.float32)
    out2 = jax.block_until_ready(neural_network_forward(x2, params, tile_rows=8))
    ref2 = reference_forward(x2, params)
    assert out2.shape == (B2, D_OUT)
    assert jnp.allclose(out2, ref2, atol=1e-5, rtol=1e-5), "mismatch vs reference (B=2048)"

    print("KERNEL_OK")
</pallas_src>

<mosaic_0001>
module attributes {stable_mosaic.version = 11 : i64} {
  func.func @mlp_kernel(%arg0: i32, %arg1: memref<42xf32, #tpu.memory_space<smem>>, %arg2: memref<8x128xf32, #tpu.memory_space<vmem>>, %arg3: memref<8x128xf32, #tpu.memory_space<vmem>>) attributes {dimension_semantics = [#tpu.dimension_semantics<parallel>], iteration_bounds = array<i64: 1>, scalar_prefetch = 1 : i64, scratch_operands = 0 : i64, tpu.core_type = #tpu.core_type<tc>, window_params = [{transform_indices = @transform_0, window_bounds = array<i64: 8, 128>}, {transform_indices = @transform_1, window_bounds = array<i64: 8, 128>}]} {
    %c0 = arith.constant 0 : index
    %c0_0 = arith.constant 0 : index
    %0 = vector.load %arg2[%c0, %c0_0] : memref<8x128xf32, #tpu.memory_space<vmem>>, vector<8x128xf32>
    %c0_1 = arith.constant 0 : index
    %1 = memref.load %arg1[%c0_1] : memref<42xf32, #tpu.memory_space<smem>>
    %2 = vector.broadcast %1 : f32 to vector<8x128xf32>
    %3 = arith.mulf %0, %2 : vector<8x128xf32>
    %c7 = arith.constant 7 : index
    %4 = memref.load %arg1[%c7] : memref<42xf32, #tpu.memory_space<smem>>
    %5 = vector.broadcast %4 : f32 to vector<8x128xf32>
    %6 = arith.addf %3, %5 : vector<8x128xf32>
    %cst = arith.constant 5.000000e-01 : f32
    %7 = vector.broadcast %cst : f32 to vector<8x128xf32>
    %8 = arith.mulf %7, %6 : vector<8x128xf32>
    %9 = math.tanh %8 : vector<8x128xf32>
    %cst_2 = arith.constant 5.000000e-01 : f32
    %10 = vector.broadcast %cst_2 : f32 to vector<8x128xf32>
    %11 = arith.mulf %10, %9 : vector<8x128xf32>
    %cst_3 = arith.constant 5.000000e-01 : f32
    %12 = vector.broadcast %cst_3 : f32 to vector<8x128xf32>
    %13 = arith.addf %11, %12 : vector<8x128xf32>
    %c1 = arith.constant 1 : index
    %14 = memref.load %arg1[%c1] : memref<42xf32, #tpu.memory_space<smem>>
    %15 = vector.broadcast %14 : f32 to vector<8x128xf32>
    %16 = arith.mulf %0, %15 : vector<8x128xf32>
    %c8 = arith.constant 8 : index
    %17 = memref.load %arg1[%c8] : memref<42xf32, #tpu.memory_space<smem>>
    %18 = vector.broadcast %17 : f32 to vector<8x128xf32>
    %19 = arith.addf %16, %18 : vector<8x128xf32>
    %cst_4 = arith.constant 5.000000e-01 : f32
    %20 = vector.broadcast %cst_4 : f32 to vector<8x128xf32>
    %21 = arith.mulf %20, %19 : vector<8x128xf32>
    %22 = math.tanh %21 : vector<8x128xf32>
    %cst_5 = arith.constant 5.000000e-01 : f32
    %23 = vector.broadcast %cst_5 : f32 to vector<8x128xf32>
    %24 = arith.mulf %23, %22 : vector<8x128xf32>
    %cst_6 = arith.constant 5.000000e-01 : f32
    %25 = vector.broadcast %cst_6 : f32 to vector<8x128xf32>
    %26 = arith.addf %24, %25 : vector<8x128xf32>
    %c2 = arith.constant 2 : index
    %27 = memref.load %arg1[%c2] : memref<42xf32, #tpu.memory_space<smem>>
    %28 = vector.broadcast %27 : f32 to vector<8x128xf32>
    %29 = arith.mulf %0, %28 : vector<8x128xf32>
    %c9 = arith.constant 9 : index
    %30 = memref.load %arg1[%c9] : memref<42xf32, #tpu.memory_space<smem>>
    %31 = vector.broadcast %30 : f32 to vector<8x128xf32>
    %32 = arith.addf %29, %31 : vector<8x128xf32>
    %cst_7 = arith.constant 5.000000e-01 : f32
    %33 = vector.broadcast %cst_7 : f32 to vector<8x128xf32>
    %34 = arith.mulf %33, %32 : vector<8x128xf32>
    %35 = math.tanh %34 : vector<8x128xf32>
    %cst_8 = arith.constant 5.000000e-01 : f32
    %36 = vector.broadcast %cst_8 : f32 to vector<8x128xf32>
    %37 = arith.mulf %36, %35 : vector<8x128xf32>
    %cst_9 = arith.constant 5.000000e-01 : f32
    %38 = vector.broadcast %cst_9 : f32 to vector<8x128xf32>
    %39 = arith.addf %37, %38 : vector<8x128xf32>
    %c3 = arith.constant 3 : index
    %40 = memref.load %arg1[%c3] : memref<42xf32, #tpu.memory_space<smem>>
    %41 = vector.broadcast %40 : f32 to vector<8x128xf32>
    %42 = arith.mulf %0, %41 : vector<8x128xf32>
    %c10 = arith.constant 10 : index
    %43 = memref.load %arg1[%c10] : memref<42xf32, #tpu.memory_space<smem>>
    %44 = vector.broadcast %43 : f32 to vector<8x128xf32>
    %45 = arith.addf %42, %44 : vector<8x128xf32>
    %cst_10 = arith.constant 5.000000e-01 : f32
    %46 = vector.broadcast %cst_10 : f32 to vector<8x128xf32>
    %47 = arith.mulf %46, %45 : vector<8x128xf32>
    %48 = math.tanh %47 : vector<8x128xf32>
    %cst_11 = arith.constant 5.000000e-01 : f32
    %49 = vector.broadcast %cst_11 : f32 to vector<8x128xf32>
    %50 = arith.mulf %49, %48 : vector<8x128xf32>
    %cst_12 = arith.constant 5.000000e-01 : f32
    %51 = vector.broadcast %cst_12 : f32 to vector<8x128xf32>
    %52 = arith.addf %50, %51 : vector<8x128xf32>
    %c4 = arith.constant 4 : index
    %53 = memref.load %arg1[%c4] : memref<42xf32, #tpu.memory_space<smem>>
    %54 = vector.broadcast %53 : f32 to vector<8x128xf32>
    %55 = arith.mulf %0, %54 : vector<8x128xf32>
    %c11 = arith.constant 11 : index
    %56 = memref.load %arg1[%c11] : memref<42xf32, #tpu.memory_space<smem>>
    %57 = vector.broadcast %56 : f32 to vector<8x128xf32>
    %58 = arith.addf %55, %57 : vector<8x128xf32>
    %cst_13 = arith.constant 5.000000e-01 : f32
    %59 = vector.broadcast %cst_13 : f32 to vector<8x128xf32>
    %60 = arith.mulf %59, %58 : vector<8x128xf32>
    %61 = math.tanh %60 : vector<8x128xf32>
    %cst_14 = arith.constant 5.000000e-01 : f32
    %62 = vector.broadcast %cst_14 : f32 to vector<8x128xf32>
    %63 = arith.mulf %62, %61 : vector<8x128xf32>
    %cst_15 = arith.constant 5.000000e-01 : f32
    %64 = vector.broadcast %cst_15 : f32 to vector<8x128xf32>
    %65 = arith.addf %63, %64 : vector<8x128xf32>
    %c5 = arith.constant 5 : index
    %66 = memref.load %arg1[%c5] : memref<42xf32, #tpu.memory_space<smem>>
    %67 = vector.broadcast %66 : f32 to vector<8x128xf32>
    %68 = arith.mulf %0, %67 : vector<8x128xf32>
    %c12 = arith.constant 12 : index
    %69 = memref.load %arg1[%c12] : memref<42xf32, #tpu.memory_space<smem>>
    %70 = vector.broadcast %69 : f32 to vector<8x128xf32>
    %71 = arith.addf %68, %70 : vector<8x128xf32>
    %cst_16 = arith.constant 5.000000e-01 : f32
    %72 = vector.broadcast %cst_16 : f32 to vector<8x128xf32>
    %73 = arith.mulf %72, %71 : vector<8x128xf32>
    %74 = math.tanh %73 : vector<8x128xf32>
    %cst_17 = arith.constant 5.000000e-01 : f32
    %75 = vector.broadcast %cst_17 : f32 to vector<8x128xf32>
    %76 = arith.mulf %75, %74 : vector<8x128xf32>
    %cst_18 = arith.constant 5.000000e-01 : f32
    %77 = vector.broadcast %cst_18 : f32 to vector<8x128xf32>
    %78 = arith.addf %76, %77 : vector<8x128xf32>
    %c6 = arith.constant 6 : index
    %79 = memref.load %arg1[%c6] : memref<42xf32, #tpu.memory_space<smem>>
    %80 = vector.broadcast %79 : f32 to vector<8x128xf32>
    %81 = arith.mulf %0, %80 : vector<8x128xf32>
    %c13 = arith.constant 13 : index
    %82 = memref.load %arg1[%c13] : memref<42xf32, #tpu.memory_space<smem>>
    %83 = vector.broadcast %82 : f32 to vector<8x128xf32>
    %84 = arith.addf %81, %83 : vector<8x128xf32>
    %cst_19 = arith.constant 5.000000e-01 : f32
    %85 = vector.broadcast %cst_19 : f32 to vector<8x128xf32>
    %86 = arith.mulf %85, %84 : vector<8x128xf32>
    %87 = math.tanh %86 : vector<8x128xf32>
    %cst_20 = arith.constant 5.000000e-01 : f32
    %88 = vector.broadcast %cst_20 : f32 to vector<8x128xf32>
    %89 = arith.mulf %88, %87 : vector<8x128xf32>
    %cst_21 = arith.constant 5.000000e-01 : f32
    %90 = vector.broadcast %cst_21 : f32 to vector<8x128xf32>
    %91 = arith.addf %89, %90 : vector<8x128xf32>
    %c14 = arith.constant 14 : index
    %92 = memref.load %arg1[%c14] : memref<42xf32, #tpu.memory_space<smem>>
    %93 = vector.broadcast %92 : f32 to vector<8x128xf32>
    %94 = arith.mulf %13, %93 : vector<8x128xf32>
    %c17 = arith.constant 17 : index
    %95 = memref.load %arg1[%c17] : memref<42xf32, #tpu.memory_space<smem>>
    %96 = vector.broadcast %95 : f32 to vector<8x128xf32>
    %97 = arith.mulf %26, %96 : vector<8x128xf32>
    %98 = arith.addf %94, %97 : vector<8x128xf32>
    %c20 = arith.constant 20 : index
    %99 = memref.load %arg1[%c20] : memref<42xf32, #tpu.memory_space<smem>>
    %100 = vector.broadcast %99 : f32 to vector<8x128xf32>
    %101 = arith.mulf %39, %100 : vector<8x128xf32>
    %102 = arith.addf %98, %101 : vector<8x128xf32>
    %c23 = arith.constant 23 : index
    %103 = memref.load %arg1[%c23] : memref<42xf32, #tpu.memory_space<smem>>
    %104 = vector.broadcast %103 : f32 to vector<8x128xf32>
    %105 = arith.mulf %52, %104 : vector<8x128xf32>
    %106 = arith.addf %102, %105 : vector<8x128xf32>
    %c26 = arith.constant 26 : index
    %107 = memref.load %arg1[%c26] : memref<42xf32, #tpu.memory_space<smem>>
    %108 = vector.broadcast %107 : f32 to vector<8x128xf32>
    %109 = arith.mulf %65, %108 : vector<8x128xf32>
    %110 = arith.addf %106, %109 : vector<8x128xf32>
    %c29 = arith.constant 29 : index
    %111 = memref.load %arg1[%c29] : memref<42xf32, #tpu.memory_space<smem>>
    %112 = vector.broadcast %111 : f32 to vector<8x128xf32>
    %113 = arith.mulf %78, %112 : vector<8x128xf32>
    %114 = arith.addf %110, %113 : vector<8x128xf32>
    %c32 = arith.constant 32 : index
    %115 = memref.load %arg1[%c32] : memref<42xf32, #tpu.memory_space<smem>>
    %116 = vector.broadcast %115 : f32 to vector<8x128xf32>
    %117 = arith.mulf %91, %116 : vector<8x128xf32>
    %118 = arith.addf %114, %117 : vector<8x128xf32>
    %c35 = arith.constant 35 : index
    %119 = memref.load %arg1[%c35] : memref<42xf32, #tpu.memory_space<smem>>
    %120 = vector.broadcast %119 : f32 to vector<8x128xf32>
    %121 = arith.addf %118, %120 : vector<8x128xf32>
    %cst_22 = arith.constant 5.000000e-01 : f32
    %122 = vector.broadcast %cst_22 : f32 to vector<8x128xf32>
    %123 = arith.mulf %122, %121 : vector<8x128xf32>
    %124 = math.tanh %123 : vector<8x128xf32>
    %cst_23 = arith.constant 5.000000e-01 : f32
    %125 = vector.broadcast %cst_23 : f32 to vector<8x128xf32>
    %126 = arith.mulf %125, %124 : vector<8x128xf32>
    %cst_24 = arith.constant 5.000000e-01 : f32
    %127 = vector.broadcast %cst_24 : f32 to vector<8x128xf32>
    %128 = arith.addf %126, %127 : vector<8x128xf32>
    %c15 = arith.constant 15 : index
    %129 = memref.load %arg1[%c15] : memref<42xf32, #tpu.memory_space<smem>>
    %130 = vector.broadcast %129 : f32 to vector<8x128xf32>
    %131 = arith.mulf %13, %130 : vector<8x128xf32>
    %c18 = arith.constant 18 : index
    %132 = memref.load %arg1[%c18] : memref<42xf32, #tpu.memory_space<smem>>
    %133 = vector.broadcast %132 : f32 to vector<8x128xf32>
    %134 = arith.mulf %26, %133 : vector<8x128xf32>
    %135 = arith.addf %131, %134 : vector<8x128xf32>
    %c21 = arith.constant 21 : index
    %136 = memref.load %arg1[%c21] : memref<42xf32, #tpu.memory_space<smem>>
    %137 = vector.broadcast %136 : f32 to vector<8x128xf32>
    %138 = arith.mulf %39, %137 : vector<8x128xf32>
    %139 = arith.addf %135, %138 : vector<8x128xf32>
    %c24 = arith.constant 24 : index
    %140 = memref.load %arg1[%c24] : memref<42xf32, #tpu.memory_space<smem>>
    %141 = vector.broadcast %140 : f32 to vector<8x128xf32>
    %142 = arith.mulf %52, %141 : vector<8x128xf32>
    %143 = arith.addf %139, %142 : vector<8x128xf32>
    %c27 = arith.constant 27 : index
    %144 = memref.load %arg1[%c27] : memref<42xf32, #tpu.memory_space<smem>>
    %145 = vector.broadcast %144 : f32 to vector<8x128xf32>
    %146 = arith.mulf %65, %145 : vector<8x128xf32>
    %147 = arith.addf %143, %146 : vector<8x128xf32>
    %c30 = arith.constant 30 : index
    %148 = memref.load %arg1[%c30] : memref<42xf32, #tpu.memory_space<smem>>
    %149 = vector.broadcast %148 : f32 to vector<8x128xf32>
    %150 = arith.mulf %78, %149 : vector<8x128xf32>
    %151 = arith.addf %147, %150 : vector<8x128xf32>
    %c33 = arith.constant 33 : index
    %152 = memref.load %arg1[%c33] : memref<42xf32, #tpu.memory_space<smem>>
    %153 = vector.broadcast %152 : f32 to vector<8x128xf32>
    %154 = arith.mulf %91, %153 : vector<8x128xf32>
    %155 = arith.addf %151, %154 : vector<8x128xf32>
    %c36 = arith.constant 36 : index
    %156 = memref.load %arg1[%c36] : memref<42xf32, #tpu.memory_space<smem>>
    %157 = vector.broadcast %156 : f32 to vector<8x128xf32>
    %158 = arith.addf %155, %157 : vector<8x128xf32>
    %cst_25 = arith.constant 5.000000e-01 : f32
    %159 = vector.broadcast %cst_25 : f32 to vector<8x128xf32>
    %160 = arith.mulf %159, %158 : vector<8x128xf32>
    %161 = math.tanh %160 : vector<8x128xf32>
    %cst_26 = arith.constant 5.000000e-01 : f32
    %162 = vector.broadcast %cst_26 : f32 to vector<8x128xf32>
    %163 = arith.mulf %162, %161 : vector<8x128xf32>
    %cst_27 = arith.constant 5.000000e-01 : f32
    %164 = vector.broadcast %cst_27 : f32 to vector<8x128xf32>
    %165 = arith.addf %163, %164 : vector<8x128xf32>
    %c16 = arith.constant 16 : index
    %166 = memref.load %arg1[%c16] : memref<42xf32, #tpu.memory_space<smem>>
    %167 = vector.broadcast %166 : f32 to vector<8x128xf32>
    %168 = arith.mulf %13, %167 : vector<8x128xf32>
    %c19 = arith.constant 19 : index
    %169 = memref.load %arg1[%c19] : memref<42xf32, #tpu.memory_space<smem>>
    %170 = vector.broadcast %169 : f32 to vector<8x128xf32>
    %171 = arith.mulf %26, %170 : vector<8x128xf32>
    %172 = arith.addf %168, %171 : vector<8x128xf32>
    %c22 = arith.constant 22 : index
    %173 = memref.load %arg1[%c22] : memref<42xf32, #tpu.memory_space<smem>>
    %174 = vector.broadcast %173 : f32 to vector<8x128xf32>
    %175 = arith.mulf %39, %174 : vector<8x128xf32>
    %176 = arith.addf %172, %175 : vector<8x128xf32>
    %c25 = arith.constant 25 : index
    %177 = memref.load %arg1[%c25] : memref<42xf32, #tpu.memory_space<smem>>
    %178 = vector.broadcast %177 : f32 to vector<8x128xf32>
    %179 = arith.mulf %52, %178 : vector<8x128xf32>
    %180 = arith.addf %176, %179 : vector<8x128xf32>
    %c28 = arith.constant 28 : index
    %181 = memref.load %arg1[%c28] : memref<42xf32, #tpu.memory_space<smem>>
    %182 = vector.broadcast %181 : f32 to vector<8x128xf32>
    %183 = arith.mulf %65, %182 : vector<8x128xf32>
    %184 = arith.addf %180, %183 : vector<8x128xf32>
    %c31 = arith.constant 31 : index
    %185 = memref.load %arg1[%c31] : memref<42xf32, #tpu.memory_space<smem>>
    %186 = vector.broadcast %185 : f32 to vector<8x128xf32>
    %187 = arith.mulf %78, %186 : vector<8x128xf32>
    %188 = arith.addf %184, %187 : vector<8x128xf32>
    %c34 = arith.constant 34 : index
    %189 = memref.load %arg1[%c34] : memref<42xf32, #tpu.memory_space<smem>>
    %190 = vector.broadcast %189 : f32 to vector<8x128xf32>
    %191 = arith.mulf %91, %190 : vector<8x128xf32>
    %192 = arith.addf %188, %191 : vector<8x128xf32>
    %c37 = arith.constant 37 : index
    %193 = memref.load %arg1[%c37] : memref<42xf32, #tpu.memory_space<smem>>
    %194 = vector.broadcast %193 : f32 to vector<8x128xf32>
    %195 = arith.addf %192, %194 : vector<8x128xf32>
    %cst_28 = arith.constant 5.000000e-01 : f32
    %196 = vector.broadcast %cst_28 : f32 to vector<8x128xf32>
    %197 = arith.mulf %196, %195 : vector<8x128xf32>
    %198 = math.tanh %197 : vector<8x128xf32>
    %cst_29 = arith.constant 5.000000e-01 : f32
    %199 = vector.broadcast %cst_29 : f32 to vector<8x128xf32>
    %200 = arith.mulf %199, %198 : vector<8x128xf32>
    %cst_30 = arith.constant 5.000000e-01 : f32
    %201 = vector.broadcast %cst_30 : f32 to vector<8x128xf32>
    %202 = arith.addf %200, %201 : vector<8x128xf32>
    %c38 = arith.constant 38 : index
    %203 = memref.load %arg1[%c38] : memref<42xf32, #tpu.memory_space<smem>>
    %204 = vector.broadcast %203 : f32 to vector<8x128xf32>
    %205 = arith.mulf %128, %204 : vector<8x128xf32>
    %c39 = arith.constant 39 : index
    %206 = memref.load %arg1[%c39] : memref<42xf32, #tpu.memory_space<smem>>
    %207 = vector.broadcast %206 : f32 to vector<8x128xf32>
    %208 = arith.mulf %165, %207 : vector<8x128xf32>
    %209 = arith.addf %205, %208 : vector<8x128xf32>
    %c40 = arith.constant 40 : index
    %210 = memref.load %arg1[%c40] : memref<42xf32, #tpu.memory_space<smem>>
    %211 = vector.broadcast %210 : f32 to vector<8x128xf32>
    %212 = arith.mulf %202, %211 : vector<8x128xf32>
    %213 = arith.addf %209, %212 : vector<8x128xf32>
    %c41 = arith.constant 41 : index
    %214 = memref.load %arg1[%c41] : memref<42xf32, #tpu.memory_space<smem>>
    %215 = vector.broadcast %214 : f32 to vector<8x128xf32>
    %216 = arith.addf %213, %215 : vector<8x128xf32>
    %cst_31 = arith.constant 5.000000e-01 : f32
    %217 = vector.broadcast %cst_31 : f32 to vector<8x128xf32>
    %218 = arith.mulf %217, %216 : vector<8x128xf32>
    %219 = math.tanh %218 : vector<8x128xf32>
    %cst_32 = arith.constant 5.000000e-01 : f32
    %220 = vector.broadcast %cst_32 : f32 to vector<8x128xf32>
    %221 = arith.mulf %220, %219 : vector<8x128xf32>
    %cst_33 = arith.constant 5.000000e-01 : f32
    %222 = vector.broadcast %cst_33 : f32 to vector<8x128xf32>
    %223 = arith.addf %221, %222 : vector<8x128xf32>
    %c0_34 = arith.constant 0 : index
    %c0_35 = arith.constant 0 : index
    %224 = vector.load %arg3[%c0_34, %c0_35] : memref<8x128xf32, #tpu.memory_space<vmem>>, vector<8x128xf32>
    tpu.vector_store %arg3[%c0_34, %c0_35], %223 {strides = array<i32>} : memref<8x128xf32, #tpu.memory_space<vmem>>, vector<8x128xf32>,
    return
  }
  func.func @transform_0(%arg0: i32, %arg1: memref<42xf32, #tpu.memory_space<smem>>) -> (i32, i32) {
    %c0_i32 = arith.constant 0 : i32
    %c0_i32_0 = arith.constant 0 : i32
    return %arg0, %c0_i32 : i32, i32
  }
  func.func @transform_1(%arg0: i32, %arg1: memref<42xf32, #tpu.memory_space<smem>>) -> (i32, i32) {
    %c0_i32 = arith.constant 0 : i32
    %c0_i32_0 = arith.constant 0 : i32
    return %arg0, %c0_i32 : i32, i32
  }
}

</mosaic_0001>

<bundles_post_ra>
// kernel: neural_network_forward.1
= control target key start
LH: loop header
LB: loop body
LE: loop exit
PB: predicated region body
PF: predicated region fallthrough
CT: control target
= control target key end

     0   :  { %s291_s12 = smov [#allocation3]   ;;  %s394_s0 = inlined_call_operand.vmem [shape: f32[42], index: 0, kind: input, shape index: {}]   ;;  %s395_s1 = inlined_call_operand.vmem [shape: f32[8,128], index: 1, kind: input, shape index: {}]   ;;  %s396_s2 = inlined_call_operand.vmem [shape: f32[8,128], index: 2, kind: output, shape index: {}]  }
   0x1   :  { %s8_s11 = sshll.u32 %s394_s0, 4  ;;  %s9_s11 = int_to_ptr.vmem [resolvable:$true] %s8_s11 }
   0x2   :  { %11 = dma.vmem_to_smem %s9_s11, 16, %s291_s12, [#allocation2] }
   0x3   :  { %289 = dma.done.wait [#allocation2], 16 }
   0x4   :  { %290 = vsyncadd [#allocation2], 4294967280 }
   0x5   :  { %14 = sfence }
   0x6   :  { %s18_s13 = sld [smem:[#allocation3]]  ;;  %v17_v0 = vld [vmem:[%s395_s1] sm:$0xff] }
   0x7   :  { %s213_s14 = sld [smem:[#allocation3 + $0x7]] }
   0x8   :  { %s214_s15 = sld [smem:[#allocation3 + $0x1]] }
   0x9   :  { %s215_s16 = sld [smem:[#allocation3 + $0x8]] }
   0xa   :  { %s216_s19 = sld [smem:[#allocation3 + $0x2]] }
   0xb   :  { %s217_s20 = sld [smem:[#allocation3 + $0x9]] }
   0xc   :  { %v19_v1 = vstv %s18_s13  ;;  %s218_s21 = sld [smem:[#allocation3 + $0x3]] }
   0xd   :  { %v20_v2 = vmul.f32 %v19_v1, %v17_v0  ;;  %v22_v3 = vstv %s213_s14  ;;  %s219_s0 = sld [smem:[#allocation3 + $0xa]] }
   0xe   :  { %v29_v4 = vstv %s214_s15  ;;  %s220_s22 = sld [smem:[#allocation3 + $0x4]] }
   0xf   :  { %v23_v5 = vadd.f32 %v22_v3, %v20_v2  ;;  %v30_v6 = vmul.f32 %v29_v4, %v17_v0  ;;  %v32_v7 = vstv %s215_s16  ;;  %s221_s23 = sld [smem:[#allocation3 + $0xb]] }
  0x10   :  { %v39_v8 = vstv %s216_s19  ;;  %s222_s24 = sld [smem:[#allocation3 + $0x5]] }
  0x11   :  { %v24_v9 = vmul.f32 0.5, %v23_v5  ;;  %v33_v10 = vadd.f32 %v32_v7, %v30_v6  ;;  %v40_v11 = vmul.f32 %v39_v8, %v17_v0  ;;  %v42_v12 = vstv %s217_s20  ;;  %s223_s1 = sld [smem:[#allocation3 + $0xc]] }
  0x12   :  { %v49_v13 = vstv %s218_s21  ;;  %s224_s25 = sld [smem:[#allocation3 + $0x6]] }
  0x13   :  { %255 = vtanh.f32 %v24_v9  ;;  %v34_v14 = vmul.f32 0.5, %v33_v10  ;;  %v43_v15 = vadd.f32 %v42_v12, %v40_v11  ;;  %v50_v16 = vmul.f32 %v49_v13, %v17_v0  ;;  %s313_s26 = sld [smem:[#allocation3 + $0xd]] }
  0x14   :  { %v52_v17 = vstv %s219_s0  ;;  %v59_v18 = vstv %s220_s22  ;;  %s315_s27 = sld [smem:[#allocation3 + $0xe]] }
  0x15   :  { %257 = vtanh.f32 %v34_v14  ;;  %v44_v19 = vmul.f32 0.5, %v43_v15  ;;  %v53_v20 = vadd.f32 %v52_v17, %v50_v16  ;;  %v60_v21 = vmul.f32 %v59_v18, %v17_v0  ;;  %s317_s28 = sld [smem:[#allocation3 + $0x11]] }
  0x16   :  { %v62_v22 = vstv %s221_s23  ;;  %v69_v23 = vstv %s222_s24  ;;  %s319_s29 = sld [smem:[#allocation3 + $0x14]] }
  0x17   :  { %259 = vtanh.f32 %v44_v19  ;;  %v54_v24 = vmul.f32 0.5, %v53_v20  ;;  %v63_v25 = vadd.f32 %v62_v22, %v60_v21  ;;  %v70_v26 = vmul.f32 %v69_v23, %v17_v0  ;;  %s321_s30 = sld [smem:[#allocation3 + $0x17]] }
  0x18   :  { %v72_v27 = vstv %s223_s1  ;;  %v79_v28 = vstv %s224_s25  ;;  %s323_s3 = sld [smem:[#allocation3 + $0x1a]] }
  0x19   :  { %v256_v29 = vpop.eup %255  ;;  %261 = vtanh.f32 %v54_v24  ;;  %v64_v30 = vmul.f32 0.5, %v63_v25  ;;  %v73_v31 = vadd.f32 %v72_v27, %v70_v26  ;;  %v80_v32 = vmul.f32 %v79_v28, %v17_v0  ;;  %s325_s4 = sld [smem:[#allocation3 + $0x1d]] }
  0x1a   :  { %v26_v33 = vmul.f32 0.5, %v256_v29  ;;  %v82_v34 = vstv %s313_s26  ;;  %s328_s5 = sld [smem:[#allocation3 + $0x20]]  ;;  %v89_v38 = vstv %s315_s27 }
  0x1b   :  { %v258_v35 = vpop.eup %257  ;;  %263 = vtanh.f32 %v64_v30  ;;  %v74_v36 = vmul.f32 0.5, %v73_v31  ;;  %v83_v37 = vadd.f32 %v82_v34, %v80_v32  ;;  %s331_s6 = sld [smem:[#allocation3 + $0x23]]  ;;  %v92_v43 = vstv %s317_s28 }
  0x1c   :  { %v333_v39 = vadd.f32 0.5, %v26_v33  ;;  %v36_v40 = vmul.f32 0.5, %v258_v35  ;;  %s335_s7 = sld [smem:[#allocation3 + $0xf]]  ;;  %v96_v48 = vstv %s319_s29 }
  0x1d   :  { %v260_v41 = vpop.eup %259  ;;  %265 = vtanh.f32 %v74_v36  ;;  %v84_v42 = vmul.f32 0.5, %v83_v37  ;;  %s338_s8 = sld [smem:[#allocation3 + $0x12]]  ;;  %v100_v53 = vstv %s321_s30 }
  0x1e   :  { %v340_v44 = vadd.f32 0.5, %v36_v40  ;;  %v46_v45 = vmul.f32 0.5, %v260_v41  ;;  %v90_v46 = vmul.f32 %v89_v38, %v333_v39  ;;  %s343_s9 = sld [smem:[#allocation3 + $0x15]]  ;;  %v104_v54 = vstv %s323_s3 }
  0x1f   :  { %v262_v47 = vpop.eup %261  ;;  %267 = vtanh.f32 %v84_v42  ;;  %s346_s10 = sld [smem:[#allocation3 + $0x18]]  ;;  %v108_v60 = vstv %s325_s4 }
  0x20   :  { %v348_v49 = vadd.f32 0.5, %v46_v45  ;;  %v56_v50 = vmul.f32 0.5, %v262_v47  ;;  %v93_v51 = vmul.f32 %v92_v43, %v340_v44  ;;  %s351_s11 = sld [smem:[#allocation3 + $0x1b]]  ;;  %v112_v61 = vstv %s328_s5 }
  0x21   :  { %v264_v52 = vpop.eup %263  ;;  %s355_s12 = sld [smem:[#allocation3 + $0x1e]]  ;;  %v116_v25 = vstv %s331_s6 }
  0x22   :  { %v57_v55 = vadd.f32 0.5, %v56_v50  ;;  %v66_v56 = vmul.f32 0.5, %v264_v52  ;;  %v94_v57 = vadd.f32 %v93_v51, %v90_v46  ;;  %v97_v58 = vmul.f32 %v96_v48, %v348_v49  ;;  %s358_s13 = sld [smem:[#allocation3 + $0x21]] }
  0x23   :  { %v266_v59 = vpop.eup %265  ;;  %v123_v62 = vstv %s335_s7  ;;  %v126_v63 = vstv %s338_s8  ;;  %s364_s14 = sld [smem:[#allocation3 + $0x24]] }
  0x24   :  { %v67_v0 = vadd.f32 0.5, %v66_v56  ;;  %v76_v1 = vmul.f32 0.5, %v266_v59  ;;  %v98_v2 = vadd.f32 %v97_v58, %v94_v57  ;;  %v101_v3 = vmul.f32 %v100_v53, %v57_v55  ;;  %s366_s15 = sld [smem:[#allocation3 + $0x10]] }
  0x25   :  { %v268_v4 = vpop.eup %267  ;;  %v124_v5 = vmul.f32 %v123_v62, %v333_v39  ;;  %v127_v6 = vmul.f32 %v126_v63, %v340_v44  ;;  %v130_v7 = vstv %s343_s9  ;;  %v134_v8 = vstv %s346_s10  ;;  %s243_s16 = sld [smem:[#allocation3 + $0x13]] }
  0x26   :  { %v77_v9 = vadd.f32 0.5, %v76_v1  ;;  %v86_v10 = vmul.f32 0.5, %v268_v4  ;;  %v102_v11 = vadd.f32 %v101_v3, %v98_v2  ;;  %v105_v12 = vmul.f32 %v104_v54, %v67_v0  ;;  %s244_s17 = sld [smem:[#allocation3 + $0x16]] }
  0x27   :  { %v128_v13 = vadd.f32 %v127_v6, %v124_v5  ;;  %v131_v14 = vmul.f32 %v130_v7, %v348_v49  ;;  %v135_v15 = vmul.f32 %v134_v8, %v57_v55  ;;  %v138_v16 = vstv %s351_s11  ;;  %s245_s18 = sld [smem:[#allocation3 + $0x19]] }
  0x28   :  { %v87_v17 = vadd.f32 0.5, %v86_v10  ;;  %v106_v18 = vadd.f32 %v105_v12, %v102_v11  ;;  %v109_v19 = vmul.f32 %v108_v60, %v77_v9  ;;  %s374_s19 = sld [smem:[#allocation3 + $0x1c]]  ;;  %v139_v21 = vmul.f32 %v138_v16, %v67_v0 }
  0x29   :  { %v132_v20 = vadd.f32 %v131_v14, %v128_v13  ;;  %v142_v22 = vstv %s355_s12  ;;  %s377_s20 = sld [smem:[#allocation3 + $0x1f]]  ;;  %v146_v26 = vstv %s358_s13  ;;  %v150_v48 = vstv %s364_s14 }
  0x2a   :  { %v110_v23 = vadd.f32 %v109_v19, %v106_v18  ;;  %v113_v24 = vmul.f32 %v112_v61, %v87_v17  ;;  %s381_s21 = sld [smem:[#allocation3 + $0x22]]  ;;  %v143_v28 = vmul.f32 %v142_v22, %v77_v9  ;;  %v157_v29 = vstv %s366_s15 }
  0x2b   :  { %v136_v27 = vadd.f32 %v135_v15, %v132_v20  ;;  %v160_v30 = vstv %s243_s16  ;;  %v158_v32 = vmul.f32 %v157_v29, %v333_v39  ;;  %v147_v36 = vmul.f32 %v146_v26, %v87_v17  ;;  %s249_s0 = sld [smem:[#allocation3 + $0x25]] }
  0x2c   :  { %v114_v31 = vadd.f32 %v113_v24, %v110_v23  ;;  %v161_v33 = vmul.f32 %v160_v30, %v340_v44  ;;  %v164_v34 = vstv %s244_s17  ;;  %s250_s22 = sld [smem:[#allocation3 + $0x26]] }
  0x2d   :  { %v140_v35 = vadd.f32 %v139_v21, %v136_v27  ;;  %v165_v37 = vmul.f32 %v164_v34, %v348_v49  ;;  %v168_v38 = vstv %s245_s18  ;;  %s251_s23 = sld [smem:[#allocation3 + $0x27]] }
  0x2e   :  { %v117_v40 = vadd.f32 %v116_v25, %v114_v31  ;;  %v162_v41 = vadd.f32 %v161_v33, %v158_v32  ;;  %v169_v42 = vmul.f32 %v168_v38, %v57_v55  ;;  %v172_v43 = vstv %s374_s19  ;;  %s252_s24 = sld [smem:[#allocation3 + $0x28]] }
  0x2f   :  { %v144_v45 = vadd.f32 %v143_v28, %v140_v35  ;;  %v176_v46 = vstv %s377_s20  ;;  %v173_v39 = vmul.f32 %v172_v43, %v67_v0  ;;  %s253_s1 = sld [smem:[#allocation3 + $0x29]] }
  0x30   :  { %v118_v47 = vmul.f32 0.5, %v117_v40  ;;  %v166_v50 = vadd.f32 %v165_v37, %v162_v41  ;;  %v180_v44 = vstv %s381_s21  ;;  %v177_v53 = vmul.f32 %v176_v46, %v77_v9 }
  0x31   :  { %v148_v51 = vadd.f32 %v147_v36, %v144_v45  ;;  %v181_v49 = vmul.f32 %v180_v44, %v87_v17  ;;  %v184_v55 = vstv %s249_s0 }
  0x32   :  { %269 = vtanh.f32 %v118_v47  ;;  %v170_v52 = vadd.f32 %v169_v42, %v166_v50  ;;  %v191_v4 = vstv %s250_s22 }
  0x33   :  { %v151_v54 = vadd.f32 %v150_v48, %v148_v51  ;;  %v194_v5 = vstv %s251_s23 }
  0x34   :  { %v174_v56 = vadd.f32 %v173_v39, %v170_v52  ;;  %v198_v10 = vstv %s252_s24 }
  0x35   :  { %v152_v57 = vmul.f32 0.5, %v151_v54  ;;  %v202_v14 = vstv %s253_s1 }
  0x36   :  { %v178_v58 = vadd.f32 %v177_v53, %v174_v56 }
  0x37   :  { %271 = vtanh.f32 %v152_v57 }
  0x38   :  { %v270_v59 = vpop.eup %269  ;;  %v182_v60 = vadd.f32 %v181_v49, %v178_v58 }
  0x39   :  { %v120_v62 = vmul.f32 0.5, %v270_v59 }
  0x3a   :  { %v185_v61 = vadd.f32 %v184_v55, %v182_v60 }
  0x3b   :  { %v121_v2 = vadd.f32 0.5, %v120_v62 }
  0x3c   :  { %v186_v63 = vmul.f32 0.5, %v185_v61 }
  0x3d   :  { %v272_v0 = vpop.eup %271  ;;  %v192_v6 = vmul.f32 %v191_v4, %v121_v2 }
  0x3e   :  { %v154_v1 = vmul.f32 0.5, %v272_v0  ;;  %273 = vtanh.f32 %v186_v63 }
  0x40   :  { %v155_v3 = vadd.f32 0.5, %v154_v1 }
  0x42   :  { %v195_v7 = vmul.f32 %v194_v5, %v155_v3 }
  0x44   :  { %v274_v8 = vpop.eup %273  ;;  %v196_v12 = vadd.f32 %v195_v7, %v192_v6 }
  0x45   :  { %v188_v9 = vmul.f32 0.5, %v274_v8 }
  0x47   :  { %v189_v11 = vadd.f32 0.5, %v188_v9 }
  0x49   :  { %v199_v13 = vmul.f32 %v198_v10, %v189_v11 }
  0x4b   :  { %v200_v15 = vadd.f32 %v199_v13, %v196_v12 }
  0x4d   :  { %v203_v16 = vadd.f32 %v202_v14, %v200_v15 }
  0x4f   :  { %v204_v17 = vmul.f32 0.5, %v203_v16 }
  0x51   :  { %275 = vtanh.f32 %v204_v17 }
  0x57   :  { %v276_v18 = vpop.eup %275 }
  0x58   :  { %v206_v19 = vmul.f32 0.5, %v276_v18 }
  0x5a   :  { %v207_v20 = vadd.f32 0.5, %v206_v19 }
  0x5c   :  { %208 = vst [vmem:[%s396_s2] sm:$0xff] %v207_v20 }

</bundles_post_ra>
